<compile_context>
chip_gen: v7x
topology: tpu7x:2x2x1
jax: 0.10.0
libtpu: 0.0.40
codegen_flags: <defaults>
</compile_context>

<pallas_src>
import functools
import math

import jax
import jax.numpy as jnp
from jax.experimental import pallas as pl
from jax.experimental.pallas import tpu as pltpu


def _pe_kernel(freq_ref, phase_ref, laneoff_ref, o_ref, *, rows_per_block, pos_per_row):
    """Fill one (rows, width) tile of the (possibly lane-packed) PE slab."""
    i = pl.program_id(0)
    rows, _ = o_ref.shape

    # Exact integer row index for this tile, then convert to the float position:
    #   pos = slab_row * pos_per_row + lane_offset
    row = jax.lax.broadcasted_iota(jnp.int32, (rows, 1), 0) + i * rows_per_block
    pos = (row * pos_per_row).astype(jnp.float32) + laneoff_ref[...]        # (rows, width)

    # Single transcendental per element: phase is 0 for even feature columns
    # (sin) and pi/2 for odd feature columns (cos == sin shifted by pi/2).
    o_ref[...] = jnp.sin(pos * freq_ref[...] + phase_ref[...]).astype(o_ref.dtype)


def _round_up(a: int, b: int) -> int:
    return -(-a // b) * b


@functools.lru_cache(maxsize=None)
def _pe_table(seq_len: int, d_model: int, dtype=jnp.float32):
    """Compute the (seq_len, d_model) sinusoidal table with a Pallas kernel."""
    assert d_model % 2 == 0, "d_model must be even (matches the PyTorch module)"

    log_base = -math.log(10000.0) / d_model
    col = jnp.arange(d_model, dtype=jnp.int32)
    k = (col - (col % 2)).astype(jnp.float32)                 # even index shared by sin/cos pair
    freq_d = jnp.exp(k * jnp.float32(log_base))               # (d_model,)
    phase_d = (col % 2).astype(jnp.float32) * jnp.float32(math.pi / 2.0)

    if d_model < 128 and 128 % d_model == 0:
        # Lane-dense layout: pack r = 128 // d_model consecutive positions into
        # each 128-lane output row so every store is a full (unmasked) vst.
        r = 128 // d_model
        width = 128
        seq_pad = _round_up(seq_len, r)
        n_rows = seq_pad // r
        freq_w = jnp.tile(freq_d, r)
        phase_w = jnp.tile(phase_d, r)
        laneoff = (jnp.arange(width, dtype=jnp.int32) // d_model).astype(jnp.float32)
        pos_per_row = r
    else:
        # d_model >= 128 (lane-dense already if it's a multiple of 128), or an
        # awkward width — keep the natural (L, d_model) layout.
        width = d_model
        seq_pad = seq_len
        n_rows = seq_len
        freq_w, phase_w = freq_d, phase_d
        laneoff = jnp.zeros((width,), jnp.float32)
        pos_per_row = 1

    freq_w = freq_w.reshape(1, width).astype(jnp.float32)
    phase_w = phase_w.reshape(1, width).astype(jnp.float32)
    laneoff = laneoff.reshape(1, width)

    # Fat tiles: per-grid-step overhead is ~0.35 us, so use few, large blocks.
    # 512 rows x 128 lanes x 4 B = 256 KiB per buffer — trivially fits VMEM on
    # v5e/v6e/v7x even double-buffered.
    max_rows_per_block = 512
    if n_rows <= max_rows_per_block:
        rows_per_block = n_rows            # single full-array block
    else:
        rows_per_block = max_rows_per_block  # multiple of 8 → layout friendly

    grid = (pl.cdiv(n_rows, rows_per_block),)
    kernel = functools.partial(
        _pe_kernel, rows_per_block=rows_per_block, pos_per_row=pos_per_row
    )

    slab = pl.pallas_call(
        kernel,
        out_shape=jax.ShapeDtypeStruct((n_rows, width), dtype),
        grid=grid,
        in_specs=[
            pl.BlockSpec((1, width), lambda i: (0, 0)),   # freq
            pl.BlockSpec((1, width), lambda i: (0, 0)),   # phase
            pl.BlockSpec((1, width), lambda i: (0, 0)),   # lane position offset
        ],
        out_specs=pl.BlockSpec((rows_per_block, width), lambda i: (i, 0)),
        compiler_params=pltpu.CompilerParams(
            dimension_semantics=("parallel",),
        ),
    )(freq_w, phase_w, laneoff)

    pe = slab.reshape(seq_pad, d_model)[:seq_len]
    return pe


def positional_embedding(x: jax.Array, d_model: int, dtype=jnp.float32) -> jax.Array:
    """Pallas equivalent of PositionalEmbedding.forward(x) -> (1, L, d_model)."""
    return _pe_table(int(x.shape[1]), int(d_model), dtype)[None]


def _reference_pe(seq_len: int, d_model: int) -> jnp.ndarray:
    """Pure-JAX reference reproducing the PyTorch buffer construction."""
    position = jnp.arange(seq_len, dtype=jnp.float32)[:, None]
    div_term = jnp.exp(
        jnp.arange(0, d_model, 2, dtype=jnp.float32) * (-math.log(10000.0) / d_model)
    )
    pe = jnp.zeros((seq_len, d_model), dtype=jnp.float32)
    pe = pe.at[:, 0::2].set(jnp.sin(position * div_term))
    pe = pe.at[:, 1::2].set(jnp.cos(position * div_term))
    return pe[None]


if __name__ == "__main__":
    key = jax.random.PRNGKey(0)

    # --- Small-shape correctness check (d_model < 128 → lane-dense slab path).
    batch, seq_len, c_in = 2, 8, 4
    d_model = 32
    x = jax.random.normal(key, (batch, seq_len, c_in), dtype=jnp.float32)

    out = jax.block_until_ready(positional_embedding(x, d_model))
    ref = _reference_pe(seq_len, d_model)
    assert out.shape == (1, seq_len, d_model), out.shape
    assert jnp.allclose(out, ref, atol=1e-5, rtol=1e-5), "mismatch vs reference (small)"

    # --- Larger shape exercising the multi-step tiled path (d_model >= 128).
    seq_len2, d_model2 = 1024, 128
    x2 = jax.random.normal(key, (1, seq_len2, 8), dtype=jnp.float32)
    out2 = jax.block_until_ready(positional_embedding(x2, d_model2))
    ref2 = _reference_pe(seq_len2, d_model2)
    assert out2.shape == (1, seq_len2, d_model2), out2.shape
    # cos(t) is computed as sin(t + pi/2); at positions ~1e3 the f32 argument
    # rounding gives O(1e-4) differences vs the direct-cos reference.
    assert jnp.max(jnp.abs(out2 - ref2)) < 1e-3, "mismatch vs reference (large)"

    print("KERNEL_OK")
</pallas_src>

<mosaic_0001>
module attributes {stable_mosaic.version = 11 : i64} {
  func.func @_pe_kernel(%arg0: i32, %arg1: memref<1x128xf32, #tpu.memory_space<vmem>>, %arg2: memref<1x128xf32, #tpu.memory_space<vmem>>, %arg3: memref<1x128xf32, #tpu.memory_space<vmem>>, %arg4: memref<2x128xf32, #tpu.memory_space<vmem>>) attributes {dimension_semantics = [#tpu.dimension_semantics<parallel>], iteration_bounds = array<i64: 1>, scalar_prefetch = 0 : i64, scratch_operands = 0 : i64, tpu.core_type = #tpu.core_type<tc>, window_params = [{pipeline_mode = #tpu.pipeline_mode<synchronous>, transform_indices = @transform_0, window_bounds = array<i64: 1, 128>}, {pipeline_mode = #tpu.pipeline_mode<synchronous>, transform_indices = @transform_1, window_bounds = array<i64: 1, 128>}, {pipeline_mode = #tpu.pipeline_mode<synchronous>, transform_indices = @transform_2, window_bounds = array<i64: 1, 128>}, {transform_indices = @transform_3, window_bounds = array<i64: 2, 128>}]} {
    %0 = tpu.iota {dimensions = array<i32: 0>} : vector<2x1xi32>
    %c2_i32 = arith.constant 2 : i32
    %1 = arith.muli %arg0, %c2_i32 : i32
    %2 = vector.broadcast %1 : i32 to vector<2x1xi32>
    %3 = arith.addi %0, %2 : vector<2x1xi32>
    %c4_i32 = arith.constant 4 : i32
    %4 = vector.broadcast %c4_i32 : i32 to vector<2x1xi32>
    %5 = arith.muli %3, %4 : vector<2x1xi32>
    %6 = arith.sitofp %5 : vector<2x1xi32> to vector<2x1xf32>
    %c0 = arith.constant 0 : index
    %c0_0 = arith.constant 0 : index
    %7 = vector.load %arg3[%c0, %c0_0] : memref<1x128xf32, #tpu.memory_space<vmem>>, vector<1x128xf32>
    %8 = vector.broadcast %6 : vector<2x1xf32> to vector<2x128xf32>
    %9 = vector.broadcast %7 : vector<1x128xf32> to vector<2x128xf32>
    %10 = arith.addf %8, %9 : vector<2x128xf32>
    %c0_1 = arith.constant 0 : index
    %c0_2 = arith.constant 0 : index
    %11 = vector.load %arg1[%c0_1, %c0_2] : memref<1x128xf32, #tpu.memory_space<vmem>>, vector<1x128xf32>
    %12 = vector.broadcast %11 : vector<1x128xf32> to vector<2x128xf32>
    %13 = arith.mulf %10, %12 : vector<2x128xf32>
    %c0_3 = arith.constant 0 : index
    %c0_4 = arith.constant 0 : index
    %14 = vector.load %arg2[%c0_3, %c0_4] : memref<1x128xf32, #tpu.memory_space<vmem>>, vector<1x128xf32>
    %15 = vector.broadcast %14 : vector<1x128xf32> to vector<2x128xf32>
    %16 = arith.addf %13, %15 : vector<2x128xf32>
    %17 = math.sin %16 : vector<2x128xf32>
    %c0_5 = arith.constant 0 : index
    %c0_6 = arith.constant 0 : index
    %18 = vector.load %arg4[%c0_5, %c0_6] : memref<2x128xf32, #tpu.memory_space<vmem>>, vector<2x128xf32>
    tpu.vector_store %arg4[%c0_5, %c0_6], %17 {strides = array<i32>} : memref<2x128xf32, #tpu.memory_space<vmem>>, vector<2x128xf32>,
    return
  }
  func.func @transform_0(%arg0: i32) -> (i32, i32) {
    %c0_i32 = arith.constant 0 : i32
    %c0_i32_0 = arith.constant 0 : i32
    %c0_i32_1 = arith.constant 0 : i32
    return %c0_i32, %c0_i32_0 : i32, i32
  }
  func.func @transform_1(%arg0: i32) -> (i32, i32) {
    %c0_i32 = arith.constant 0 : i32
    %c0_i32_0 = arith.constant 0 : i32
    %c0_i32_1 = arith.constant 0 : i32
    return %c0_i32, %c0_i32_0 : i32, i32
  }
  func.func @transform_2(%arg0: i32) -> (i32, i32) {
    %c0_i32 = arith.constant 0 : i32
    %c0_i32_0 = arith.constant 0 : i32
    %c0_i32_1 = arith.constant 0 : i32
    return %c0_i32, %c0_i32_0 : i32, i32
  }
  func.func @transform_3(%arg0: i32) -> (i32, i32) {
    %c0_i32 = arith.constant 0 : i32
    %c0_i32_0 = arith.constant 0 : i32
    return %arg0, %c0_i32 : i32, i32
  }
}

</mosaic_0001>

<bundles_post_ra>
// kernel: tpu_custom_call.1
= control target key start
LH: loop header
LB: loop body
LE: loop exit
PB: predicated region body
PF: predicated region fallthrough
CT: control target
= control target key end

     0   :  { %8 = vsyncpa [#allocation3], 0  ;;  %s328_s0 = inlined_call_operand.hbm [shape: f32[1,128], index: 0, kind: input, shape index: {}]   ;;  %s329_s1 = inlined_call_operand.vmem [shape: f32[1,128], index: 1, kind: input, shape index: {}]   ;;  %s330_s2 = inlined_call_operand.vmem [shape: f32[1,128], index: 2, kind: input, shape index: {}]   ;;  %s331_s3 = inlined_call_operand.hbm [shape: f32[2,128], index: 3, kind: output, shape index: {}]  }
   0x1   :  { %9 = vsyncpa [#allocation4], 0  ;;  %s249_s12 = smov [#allocation2]   ;;  %s201_s16 = scalar_lea.hbm %s328_s0, 16 }
   0x2   :  { %s16_s13 = sshll.u32 %s249_s12, 4  ;;  %p202_p0 = scmp.ne.s32.totalorder %s328_s0, %s201_s16  ;;  %s17_s13 = int_to_ptr.vmem [resolvable:$true] %s16_s13 }
   0x3   :  { %p205_p1 = scmp.lt.u32.totalorder %s201_s16, %s328_s0 }
   0x5   :  { %p207_p2 = pnand %p205_p1, %p202_p0 }
   0x7   :  { %210 = shalt.err (!%p207_p2)
}
   0x8   :  { %s211_s21 = scalar_lea.vmem %s17_s13, 16  ;;  %s215_s22 = scalar_lea.vmem %s17_s13, 32 }
   0x9   :  { %p212_p3 = scmp.ne.s32.totalorder %s17_s13, %s211_s21  ;;  %p216_p4 = scmp.lt.s32.totalorder %s17_s13, %s17_s13 }
   0xa   :  { %p217_p5 = scmp.lt.s32.totalorder %s215_s22, %s211_s21 }
   0xc   :  { %p218_p6 = por %p217_p5, %p216_p4 }
   0xe   :  { %p219_p7 = pnand %p218_p6, %p212_p3 }
  0x10   :  { %222 = shalt.err (!%p219_p7)
}
  0x11   :  { %19 = dma.hbm_to_vmem [thread:$0]  %s328_s0, 16, %s17_s13, [#allocation3]  }
  0x12   :  { %245 = dma.done.wait [#allocation3], 16  }
  0x13   :  { %246 = vsyncadd [#allocation3], 4294967280  ;;  %v27_v0 = vlaneseq  ;;  %v178_v4 = vld [vmem:[%s330_s2] ss:$0 sm:$0xff]  ;;  %v250_v21 = vmov 683565275  }
  0x14   :  { %v179_v5 = vld [vmem:[#allocation2] ss:$0 sm:$0xff]  ;;  %v251_v23 = vmov 2475754826   ;;  %v252_v25 = vmov 2131351028  }
  0x15   :  { %v28_v1 = vshrl.u32 %v27_v0, 7  ;;  %v180_v7 = vld [vmem:[%s329_s1] ss:$0 sm:$0xff]  ;;  %v253_v27 = vmov 2102212464   ;;  %s256_s0 = smov [#allocation5]  }
  0x16   :  { %v254_v29 = vmov 920167782   ;;  %v255_v36 = vmov 1326507024   ;;  %s169_s1 = sshll.u32 %s256_s0, 4  ;;  %s170_s1 = int_to_ptr.vmem [resolvable:$true] %s169_s1 }
  0x17   :  { %v32_v2 = vmul.u32 4, %v28_v1  ;;  %s223_s2 = scalar_lea.vmem %s170_s1, 32  ;;  %p228_p9 = scmp.lt.s32.totalorder %s170_s1, %s170_s1 }
  0x18   :  { %p224_p8 = scmp.ne.s32.totalorder %s170_s1, %s223_s2  ;;  %p229_p10 = scmp.lt.s32.totalorder %s223_s2, %s223_s2 }
  0x19   :  { %v33_v3 = vcvt.s32.f32 %v32_v2 }
  0x1a   :  { %p230_p11 = por %p229_p10, %p228_p9 }
  0x1b   :  { %v41_v6 = vadd.f32 %v178_v4, %v33_v3 }
  0x1c   :  { %p231_p12 = pnand %p230_p11, %p224_p8 }
  0x1d   :  { %v49_v8 = vmul.f32 %v179_v5, %v41_v6 }
  0x1f   :  { %v295_v9 = vadd.f32 %v180_v7, %v49_v8 }
  0x21   :  { %v61_v10 = vand.u32 2139095040, %v295_v9  ;;  %v58_v12 = vand.u32 2147483647, %v295_v9  ;;  %vm60_vm7 = vcmp.lt.s32.totalorder %v295_v9, 0  ;;  %vm150_vm12 = vweird.f32 %v295_v9 }
  0x23   :  { %v62_v11 = vshrl.u32 %v61_v10, 23  ;;  %v65_v15 = vand.u32 8388607, %v58_v12  ;;  %vm59_vm8 = vcmp.le.f32.partialorder %v58_v12, 0.7853982 }
  0x25   :  { %v181_v13 = vadd.s32 4294967169, %v62_v11  ;;  %v66_v18 = vor.u32 8388608, %v65_v15 }
  0x27   :  { %v68_v14 = vadd.s32 1, %v181_v13  ;;  %v106_v38 = vshll.u32 %v66_v18, 8 }
  0x29   :  { %vm69_vm0 = vcmp.gt.s32.totalorder %v68_v14, 0 }
  0x2a   :  { %v70_v16 = vsel %vm69_vm0, %v68_v14, 0 }
  0x2b   :  { %v72_v17 = vand.u32 31, %v70_v16  ;;  %v71_v19 = vshrl.u32 %v70_v16, 5 }
  0x2d   :  { %v73_v20 = vsub.s32 32, %v72_v17  ;;  %v75_v22 = vshll.u32 %v250_v21, %v72_v17  ;;  %v78_v24 = vshll.u32 %v251_v23, %v72_v17  ;;  %v81_v26 = vshll.u32 %v252_v25, %v72_v17 }
  0x2e   :  { %v84_v28 = vshll.u32 %v253_v27, %v72_v17  ;;  %v87_v30 = vshll.u32 %v254_v29, %v72_v17  ;;  %vm90_vm1 = vcmp.lt.s32.totalorder %v71_v19, 1  ;;  %vm93_vm2 = vcmp.lt.s32.totalorder %v71_v19, 4 }
  0x2f   :  { %v74_v31 = vshrl.u32 %v250_v21, %v73_v20  ;;  %v76_v32 = vshrl.u32 %v251_v23, %v73_v20  ;;  %v79_v33 = vshrl.u32 %v252_v25, %v73_v20  ;;  %v82_v34 = vshrl.u32 %v253_v27, %v73_v20 }
  0x30   :  { %v85_v35 = vshrl.u32 %v254_v29, %v73_v20  ;;  %v88_v37 = vshrl.u32 %v255_v36, %v73_v20  ;;  %vm91_vm3 = vcmp.lt.s32.totalorder %v71_v19, 2  ;;  %vm92_vm4 = vcmp.lt.s32.totalorder %v71_v19, 3 }
  0x31   :  { %v77_v39 = vor.u32 %v76_v32, %v75_v22  ;;  %v80_v40 = vor.u32 %v79_v33, %v78_v24  ;;  %v83_v41 = vor.u32 %v82_v34, %v81_v26 }
  0x32   :  { %v86_v42 = vor.u32 %v85_v35, %v84_v28  ;;  %v89_v43 = vor.u32 %v88_v37, %v87_v30 }
  0x33   :  { %v94_v44 = vsel %vm90_vm1, %v74_v31, %v77_v39  ;;  %v95_v45 = vsel %vm93_vm2, %v83_v41, 2102212464  ;;  %v98_v46 = vsel %vm90_vm1, %v77_v39, %v80_v40  ;;  %v102_v47 = vsel %vm90_vm1, %v80_v40, %v83_v41 }
  0x34   :  { %v96_v48 = vsel %vm92_vm4, %v80_v40, %v95_v45  ;;  %v99_v49 = vsel %vm93_vm2, %v86_v42, 920167782  ;;  %v103_v50 = vsel %vm93_vm2, %v89_v43, 1326507024 }
  0x35   :  { %v100_v51 = vsel %vm92_vm4, %v83_v41, %v99_v49  ;;  %v104_v52 = vsel %vm92_vm4, %v86_v42, %v103_v50  ;;  %v97_v53 = vsel %vm91_vm3, %v94_v44, %v96_v48 }
  0x36   :  { %v101_v54 = vsel %vm91_vm3, %v98_v46, %v100_v51  ;;  %v105_v55 = vsel %vm91_vm3, %v102_v47, %v104_v52  ;;  %v113_v60 = vmul.u32 %v106_v38, %v97_v53 }
  0x37   :  { %v301_v56 = vmul.u32.u64.low %v106_v38, %v105_v55  ;;  %v302_v57 = vmul.u32.u64.high %v106_v38, %v105_v55, %v301_v56  ;;  %v304_v58 = vmul.u32.u64.low %v106_v38, %v101_v54  ;;  %v305_v59 = vmul.u32.u64.high %v106_v38, %v101_v54, %v304_v58 }
  0x39   :  { %vm115_vm5 = vc.u32 %v302_v57, %v304_v58  ;;  %v116_v61 = vadd.s32 1, %v305_v59  ;;  %v114_v8 = vadd.s32 %v304_v58, %v302_v57 }
  0x3b   :  { %v117_v62 = vsel %vm115_vm5, %v116_v61, %v305_v59 }
  0x3c   :  { %v118_v63 = vadd.s32 %v117_v62, %v113_v60 }
  0x3e   :  { %v119_v0 = vadd.s32 536870912, %v118_v63 }
  0x40   :  { %v120_v1 = vshrl.u32 %v119_v0, 30 }
  0x42   :  { %v121_v2 = vshll.u32 %v120_v1, 30  ;;  %v144_v22 = vsub.s32 4, %v120_v1 }
  0x44   :  { %v122_v3 = vsub.s32 %v118_v63, %v121_v2  ;;  %v145_v25 = vsel %vm60_vm7, %v144_v22, %v120_v1 }
  0x45   :  { %v147_v28 = vsel %vm59_vm8, 0, %v145_v25 }
  0x46   :  { %v124_v4 = vsub.s32 0, %v122_v3  ;;  %v151_v29 = vadd.s32 3, %v147_v28 }
  0x48   :  { %v182_v5 = vmin.u32 %v124_v4, %v122_v3  ;;  %v152_v30 = vand.u32 3, %v151_v29 }
  0x4a   :  { %v126_v6 = vclz %v182_v5  ;;  %vm157_vm9 = vcmp.eq.s32.totalorder %v152_v30, 2  ;;  %vm154_vm10 = vcmp.eq.s32.totalorder %v152_v30, 0  ;;  %vm153_vm11 = vcmp.lt.s32.totalorder %v152_v30, 2 }
  0x4c   :  { %v183_v7 = vadd.s32 4294967294, %v126_v6 }
  0x4e   :  { %vm184_vm6 = vcmp.lt.s32.totalorder %v183_v7, 0 }
  0x4f   :  { %v129_v10 = vsel %vm184_vm6, 0, %v183_v7 }
  0x50   :  { %v130_v11 = vsub.s32 32, %v129_v10  ;;  %v131_v13 = vshll.u32 %v122_v3, %v129_v10  ;;  %v134_v14 = vsub.s32 4294967266, %v129_v10 }
  0x52   :  { %v132_v15 = vshrl.u32 %v114_v8, %v130_v11  ;;  %v135_v16 = vadd.s32 127, %v134_v14 }
  0x54   :  { %v133_v17 = vor.u32 %v132_v15, %v131_v13  ;;  %v136_v18 = vshll.u32 %v135_v16, 23 }
  0x56   :  { %v137_v19 = vor.u32 4788187, %v136_v18  ;;  %v140_v20 = vcvt.s32.f32 %v133_v17 }
  0x58   :  { %v138_v21 = vand.u32 2147483647, %v137_v19 }
  0x5a   :  { %v141_v23 = vmul.f32 %v140_v20, %v138_v21 }
  0x5c   :  { %v142_v24 = vxor.u32 2147483648, %v141_v23 }
  0x5e   :  { %v143_v26 = vsel %vm60_vm7, %v142_v24, %v141_v23 }
  0x5f   :  { %v146_v27 = vsel %vm59_vm8, %v295_v9, %v143_v26 }
  0x60   :  { %197 = vcosq.f32 %v146_v27 }
  0x61   :  { %199 = vsinq.f32 %v146_v27 }
  0x6a   :  { %v198_v31 = vpop.eup %197 }
  0x6b   :  { %v200_v32 = vpop.eup %199  ;;  %v158_v33 = vxor.u32 2147483648, %v198_v31 }
  0x6c   :  { %v155_v34 = vxor.u32 2147483648, %v200_v32 }
  0x6d   :  { %v159_v12 = vsel %vm157_vm9, %v158_v33, %v200_v32 }
  0x6e   :  { %v156_v35 = vsel %vm154_vm10, %v198_v31, %v155_v34 }
  0x6f   :  { %v160_v36 = vsel %vm153_vm11, %v156_v35, %v159_v12 }
  0x70   :  { %v161_v37 = vsel %vm150_vm12, nan, %v160_v36 }
  0x71   :  { %162 = vst [vmem:[#allocation5] sm:$0x3] %v161_v37 }
  0x72   :  { %234 = shalt.err (!%p231_p12)
}
  0x73   :  { %s235_s4 = scalar_lea.hbm %s331_s3, 32 }
  0x74   :  { %p236_p13 = scmp.ne.s32.totalorder %s331_s3, %s235_s4  ;;  %p239_p0 = scmp.lt.u32.totalorder %s235_s4, %s331_s3 }
  0x76   :  { %p241_p1 = pnand %p239_p0, %p236_p13 }
  0x78   :  { %244 = shalt.err (!%p241_p1)
}
  0x79   :  { %172 = dma.vmem_to_hbm [thread:$0]  %s170_s1, 32, %s331_s3, [#allocation4]  }
  0x7a   :  { %247 = dma.done.wait [#allocation4], 32  }
  0x7b   :  { %248 = vsyncadd [#allocation4], 4294967264 }
  0x7c   :  { %176 = vsyncpa [#allocation3], 1 }
  0x7d   :  { %177 = vsyncpa [#allocation4], 1 }

</bundles_post_ra>
